<compile_context>
chip_gen: v5e
topology: v5e:2x2
jax: 0.10.0
libtpu: 0.0.40
codegen_flags: <defaults>
</compile_context>

<pallas_src>
import jax
import jax.numpy as jnp
from jax.experimental import pallas as pl
from jax.experimental.pallas import tpu as pltpu


def _round_up(x, m):
    return (x + m - 1) // m * m


def _fused_critic_kernel(s_ref, a_ref, w1s_ref, w1a_ref, b1_ref,
                         w2_ref, b2_ref, w3_ref, b3_ref, q_ref):
    """q = relu(relu([s,a]@W1 + b1) @ W2 + b2) @ W3 + b3, all critics fused."""
    dt = w1s_ref.dtype                       # matmul compute dtype (bf16/f32)
    # Layer 1: split-K dot (state rows + action rows), f32 accumulation.
    h1 = jnp.dot(s_ref[...].astype(dt), w1s_ref[...],
                 preferred_element_type=jnp.float32)
    h1 = h1 + jnp.dot(a_ref[...].astype(dt), w1a_ref[...],
                      preferred_element_type=jnp.float32)
    h1 = jnp.maximum(h1 + b1_ref[...], 0.0).astype(dt)

    # Layers 2+3: unrolled loop over critic groups (128-aligned slices), so
    # no MXU work is spent on the zeros of a block-diagonal W2.
    ng, h1b, _ = w2_ref.shape
    q = b3_ref[...]                          # (1, OUTP) -> broadcasts over rows
    for g in range(ng):
        h2 = jnp.dot(h1[:, g * h1b:(g + 1) * h1b], w2_ref[g],
                     preferred_element_type=jnp.float32)
        h2 = jnp.maximum(h2 + b2_ref[g], 0.0).astype(dt)
        q = q + jnp.dot(h2, w3_ref[g], preferred_element_type=jnp.float32)
    q_ref[...] = q


def pack_critics(params_list, input_dims, n_actions,
                 compute_dtype=jnp.bfloat16):
    """Pack N independent critics into one fused, lane-aligned weight set.

    Each entry of params_list is (w1, b1, w2, b2, w3, b3) with
      w1: (input_dims + n_actions, fc1)   (transposed torch fc1.weight)
      b1: (fc1,), w2: (fc1, fc2), b2: (fc2,), w3: (fc2, 1), b3: (1,)
    """
    nc = len(params_list)
    ds, da = input_dims, n_actions
    fc1 = params_list[0][0].shape[1]
    fc2 = params_list[0][2].shape[1]

    # Group critics so each group's concatenated hidden width fills one
    # 128-lane block when the per-critic dims are small.
    if fc1 <= 128 and fc2 <= 128:
        cpg = max(1, min(128 // fc1, 128 // fc2))
    else:
        cpg = 1
    cpg = min(cpg, nc)
    ng = -(-nc // cpg)                       # ceil(nc / cpg)
    h1b = _round_up(cpg * fc1, 128)
    h2b = _round_up(cpg * fc2, 128)
    H1 = ng * h1b
    outp = _round_up(nc, 128)                # lane-dense q head

    w1s = jnp.zeros((ds, H1), jnp.float32)
    w1a = jnp.zeros((da, H1), jnp.float32)
    b1 = jnp.zeros((1, H1), jnp.float32)
    w2 = jnp.zeros((ng, h1b, h2b), jnp.float32)
    b2 = jnp.zeros((ng, 1, h2b), jnp.float32)
    w3 = jnp.zeros((ng, h2b, outp), jnp.float32)
    b3 = jnp.zeros((1, outp), jnp.float32)

    for c, (w1_c, b1_c, w2_c, b2_c, w3_c, b3_c) in enumerate(params_list):
        g, l = divmod(c, cpg)
        col0 = g * h1b + l * fc1
        w1s = w1s.at[:, col0:col0 + fc1].set(w1_c[:ds])
        w1a = w1a.at[:, col0:col0 + fc1].set(w1_c[ds:])
        b1 = b1.at[0, col0:col0 + fc1].set(b1_c)
        w2 = w2.at[g, l * fc1:(l + 1) * fc1, l * fc2:(l + 1) * fc2].set(w2_c)
        b2 = b2.at[g, 0, l * fc2:(l + 1) * fc2].set(b2_c)
        w3 = w3.at[g, l * fc2:(l + 1) * fc2, c].set(w3_c[:, 0])
        b3 = b3.at[0, c].set(b3_c[0])

    return dict(nc=nc, ds=ds, da=da,
                w1s=w1s.astype(compute_dtype), w1a=w1a.astype(compute_dtype),
                b1=b1,
                w2=w2.astype(compute_dtype), b2=b2,
                w3=w3.astype(compute_dtype), b3=b3)


def _choose_batch_tile(b, batch_tile):
    if b <= 16:
        return b                             # tiny batch: one full block
    # Aim for >= 2 grid steps (shards across v7x's 2 TensorCores) while
    # letting large batches use big tiles (few pipeline steps on v5e/v6e).
    bt = min(batch_tile, _round_up(pl.cdiv(b, 2), 8))
    return max(8, (bt // 8) * 8)


def critic_forward(state, action, fused, batch_tile=1024):
    """Fused SAC critic forward. Returns (B, n_critics) Q-values (f32)."""
    b, ds = state.shape
    da = action.shape[1]
    assert ds == fused["ds"] and da == fused["da"]
    nc = fused["nc"]
    w1s, w1a, b1 = fused["w1s"], fused["w1a"], fused["b1"]
    w2, b2, w3, b3 = fused["w2"], fused["b2"], fused["w3"], fused["b3"]
    H1 = w1s.shape[1]
    ng, h1b, h2b = w2.shape
    outp = b3.shape[1]

    bt = _choose_batch_tile(b, batch_tile)
    bp = _round_up(b, bt)
    if bp != b:                              # rows-only pad for ragged batches
        state = jnp.pad(state, ((0, bp - b), (0, 0)))
        action = jnp.pad(action, ((0, bp - b), (0, 0)))

    const2 = lambda i: (0, 0)                # weights stay VMEM-resident
    const3 = lambda i: (0, 0, 0)
    out = pl.pallas_call(
        _fused_critic_kernel,
        out_shape=jax.ShapeDtypeStruct((bp, outp), jnp.float32),
        grid_spec=pltpu.PrefetchScalarGridSpec(
            num_scalar_prefetch=0,
            grid=(bp // bt,),
            in_specs=[
                pl.BlockSpec((bt, ds), lambda i: (i, 0)),    # state
                pl.BlockSpec((bt, da), lambda i: (i, 0)),    # action
                pl.BlockSpec((ds, H1), const2),              # W1 (state rows)
                pl.BlockSpec((da, H1), const2),              # W1 (action rows)
                pl.BlockSpec((1, H1), const2),               # b1
                pl.BlockSpec((ng, h1b, h2b), const3),        # W2 (stacked)
                pl.BlockSpec((ng, 1, h2b), const3),          # b2 (stacked)
                pl.BlockSpec((ng, h2b, outp), const3),       # W3 (stacked)
                pl.BlockSpec((1, outp), const2),             # b3
            ],
            out_specs=pl.BlockSpec((bt, outp), lambda i: (i, 0)),
        ),
        compiler_params=pltpu.CompilerParams(
            dimension_semantics=("parallel",)),
    )(state, action, w1s, w1a, b1, w2, b2, w3, b3)
    return out[:b, :nc]


def init_critic_params(key, input_dims, n_actions, fc1_dims, fc2_dims):
    """Deterministic init mimicking torch.nn.Linear (U[-1/sqrt(fan_in), ...])."""
    ks = jax.random.split(key, 6)

    def uni(k, shape, fan_in):
        bound = 1.0 / jnp.sqrt(fan_in)
        return jax.random.uniform(k, shape, jnp.float32, -bound, bound)

    din = input_dims + n_actions
    w1 = uni(ks[0], (din, fc1_dims), din)
    b1 = uni(ks[1], (fc1_dims,), din)
    w2 = uni(ks[2], (fc1_dims, fc2_dims), fc1_dims)
    b2 = uni(ks[3], (fc2_dims,), fc1_dims)
    w3 = uni(ks[4], (fc2_dims, 1), fc2_dims)
    b3 = uni(ks[5], (1,), fc2_dims)
    return (w1, b1, w2, b2, w3, b3)


def critic_reference(state, action, p):
    """Plain-JAX replica of CriticNetwork.forward for one critic."""
    w1, b1, w2, b2, w3, b3 = p
    x = jnp.concatenate([state, action], axis=1)
    h = jnp.maximum(x @ w1 + b1, 0.0)
    h = jnp.maximum(h @ w2 + b2, 0.0)
    return h @ w3 + b3


if __name__ == "__main__":
    # Small, module-consistent shapes: batch=2, input_dims=[16], n_actions=4,
    # fc1_dims=32, fc2_dims=32.  Two critics = SAC twin Q networks.
    key = jax.random.PRNGKey(0)
    k_s, k_a, k_p1, k_p2 = jax.random.split(key, 4)

    batch, input_dims, n_actions, fc1_dims, fc2_dims = 2, 16, 4, 32, 32
    state = jax.random.normal(k_s, (batch, input_dims), jnp.float32)
    action = jax.random.normal(k_a, (batch, n_actions), jnp.float32)

    params = [init_critic_params(k, input_dims, n_actions, fc1_dims, fc2_dims)
              for k in (k_p1, k_p2)]
    q_ref = jnp.concatenate(
        [critic_reference(state, action, p) for p in params], axis=1)

    # Default path: bf16 matmul inputs, f32 accumulation (MXU-native).
    fused = pack_critics(params, input_dims, n_actions)          # bf16 default
    q = jax.block_until_ready(critic_forward(state, action, fused))
    assert q.shape == (batch, len(params))
    assert jnp.allclose(q, q_ref, atol=1e-1, rtol=1e-1)

    # Opt-in f32 reference mode (bit-tight against the plain-JAX reference).
    fused_f32 = pack_critics(params, input_dims, n_actions, jnp.float32)
    q_f32 = jax.block_until_ready(critic_forward(state, action, fused_f32))
    assert jnp.allclose(q_f32, q_ref, atol=1e-5, rtol=1e-5)

    # TODO(synk): the Adam optimizer and checkpoint save/load in the PyTorch
    # module are host-side training utilities with no kernel equivalent.
    print("KERNEL_OK")
</pallas_src>

<mosaic_0001>
module attributes {stable_mosaic.version = 11 : i64} {
  func.func @_fused_critic_kernel(%arg0: i32, %arg1: memref<2x16xf32, #tpu.memory_space<vmem>>, %arg2: memref<2x4xf32, #tpu.memory_space<vmem>>, %arg3: memref<16x128xbf16, #tpu.memory_space<vmem>>, %arg4: memref<4x128xbf16, #tpu.memory_space<vmem>>, %arg5: memref<1x128xf32, #tpu.memory_space<vmem>>, %arg6: memref<1x128x128xbf16, #tpu.memory_space<vmem>>, %arg7: memref<1x1x128xf32, #tpu.memory_space<vmem>>, %arg8: memref<1x128x128xbf16, #tpu.memory_space<vmem>>, %arg9: memref<1x128xf32, #tpu.memory_space<vmem>>, %arg10: memref<2x128xf32, #tpu.memory_space<vmem>>) attributes {dimension_semantics = [#tpu.dimension_semantics<parallel>], iteration_bounds = array<i64: 1>, scalar_prefetch = 0 : i64, scratch_operands = 0 : i64, tpu.core_type = #tpu.core_type<tc>, window_params = [{transform_indices = @transform_0, window_bounds = array<i64: 2, 16>}, {transform_indices = @transform_1, window_bounds = array<i64: 2, 4>}, {pipeline_mode = #tpu.pipeline_mode<synchronous>, transform_indices = @transform_2, window_bounds = array<i64: 16, 128>}, {pipeline_mode = #tpu.pipeline_mode<synchronous>, transform_indices = @transform_3, window_bounds = array<i64: 4, 128>}, {pipeline_mode = #tpu.pipeline_mode<synchronous>, transform_indices = @transform_4, window_bounds = array<i64: 1, 128>}, {pipeline_mode = #tpu.pipeline_mode<synchronous>, transform_indices = @transform_5, window_bounds = array<i64: 1, 128, 128>}, {pipeline_mode = #tpu.pipeline_mode<synchronous>, transform_indices = @transform_6, window_bounds = array<i64: 1, 1, 128>}, {pipeline_mode = #tpu.pipeline_mode<synchronous>, transform_indices = @transform_7, window_bounds = array<i64: 1, 128, 128>}, {pipeline_mode = #tpu.pipeline_mode<synchronous>, transform_indices = @transform_8, window_bounds = array<i64: 1, 128>}, {transform_indices = @transform_9, window_bounds = array<i64: 2, 128>}]} {
    %c0 = arith.constant 0 : index
    %c0_0 = arith.constant 0 : index
    %0 = vector.load %arg1[%c0, %c0_0] : memref<2x16xf32, #tpu.memory_space<vmem>>, vector<2x16xf32>
    %1 = arith.truncf %0 : vector<2x16xf32> to vector<2x16xbf16>
    %c0_1 = arith.constant 0 : index
    %c0_2 = arith.constant 0 : index
    %2 = vector.load %arg3[%c0_1, %c0_2] : memref<16x128xbf16, #tpu.memory_space<vmem>>, vector<16x128xbf16>
    %cst = arith.constant dense<0.000000e+00> : vector<2x128xf32>
    %3 = tpu.matmul %1, %2, %cst {dimension_numbers = #tpu.dot_dimension_numbers<[1], [0], [0], [1], [0, 0, 1, 1], [], []>} : vector<2x16xbf16>, vector<16x128xbf16>, vector<2x128xf32> -> vector<2x128xf32>
    %c0_3 = arith.constant 0 : index
    %c0_4 = arith.constant 0 : index
    %4 = vector.load %arg2[%c0_3, %c0_4] : memref<2x4xf32, #tpu.memory_space<vmem>>, vector<2x4xf32>
    %5 = arith.truncf %4 : vector<2x4xf32> to vector<2x4xbf16>
    %c0_5 = arith.constant 0 : index
    %c0_6 = arith.constant 0 : index
    %6 = vector.load %arg4[%c0_5, %c0_6] : memref<4x128xbf16, #tpu.memory_space<vmem>>, vector<4x128xbf16>
    %cst_7 = arith.constant dense<0.000000e+00> : vector<2x128xf32>
    %7 = tpu.matmul %5, %6, %cst_7 {dimension_numbers = #tpu.dot_dimension_numbers<[1], [0], [0], [1], [0, 0, 1, 1], [], []>} : vector<2x4xbf16>, vector<4x128xbf16>, vector<2x128xf32> -> vector<2x128xf32>
    %8 = arith.addf %3, %7 : vector<2x128xf32>
    %c0_8 = arith.constant 0 : index
    %c0_9 = arith.constant 0 : index
    %9 = vector.load %arg5[%c0_8, %c0_9] : memref<1x128xf32, #tpu.memory_space<vmem>>, vector<1x128xf32>
    %10 = vector.broadcast %9 : vector<1x128xf32> to vector<2x128xf32>
    %11 = arith.addf %8, %10 : vector<2x128xf32>
    %cst_10 = arith.constant 0.000000e+00 : f32
    %12 = vector.broadcast %cst_10 : f32 to vector<2x128xf32>
    %13 = arith.maximumf %11, %12 : vector<2x128xf32>
    %14 = arith.truncf %13 : vector<2x128xf32> to vector<2x128xbf16>
    %c0_11 = arith.constant 0 : index
    %c0_12 = arith.constant 0 : index
    %15 = vector.load %arg9[%c0_11, %c0_12] : memref<1x128xf32, #tpu.memory_space<vmem>>, vector<1x128xf32>
    %c0_13 = arith.constant 0 : index
    %c0_14 = arith.constant 0 : index
    %c0_15 = arith.constant 0 : index
    %16 = vector.load %arg6[%c0_13, %c0_14, %c0_15] : memref<1x128x128xbf16, #tpu.memory_space<vmem>>, vector<1x128x128xbf16>
    %17 = vector.shape_cast %16 : vector<1x128x128xbf16> to vector<128x128xbf16>
    %cst_16 = arith.constant dense<0.000000e+00> : vector<2x128xf32>
    %18 = tpu.matmul %14, %17, %cst_16 {dimension_numbers = #tpu.dot_dimension_numbers<[1], [0], [0], [1], [0, 0, 1, 1], [], []>} : vector<2x128xbf16>, vector<128x128xbf16>, vector<2x128xf32> -> vector<2x128xf32>
    %c0_17 = arith.constant 0 : index
    %c0_18 = arith.constant 0 : index
    %c0_19 = arith.constant 0 : index
    %19 = vector.load %arg7[%c0_17, %c0_18, %c0_19] : memref<1x1x128xf32, #tpu.memory_space<vmem>>, vector<1x1x128xf32>
    %20 = vector.shape_cast %19 : vector<1x1x128xf32> to vector<1x128xf32>
    %21 = vector.broadcast %20 : vector<1x128xf32> to vector<2x128xf32>
    %22 = arith.addf %18, %21 : vector<2x128xf32>
    %cst_20 = arith.constant 0.000000e+00 : f32
    %23 = vector.broadcast %cst_20 : f32 to vector<2x128xf32>
    %24 = arith.maximumf %22, %23 : vector<2x128xf32>
    %25 = arith.truncf %24 : vector<2x128xf32> to vector<2x128xbf16>
    %c0_21 = arith.constant 0 : index
    %c0_22 = arith.constant 0 : index
    %c0_23 = arith.constant 0 : index
    %26 = vector.load %arg8[%c0_21, %c0_22, %c0_23] : memref<1x128x128xbf16, #tpu.memory_space<vmem>>, vector<1x128x128xbf16>
    %27 = vector.shape_cast %26 : vector<1x128x128xbf16> to vector<128x128xbf16>
    %cst_24 = arith.constant dense<0.000000e+00> : vector<2x128xf32>
    %28 = tpu.matmul %25, %27, %cst_24 {dimension_numbers = #tpu.dot_dimension_numbers<[1], [0], [0], [1], [0, 0, 1, 1], [], []>} : vector<2x128xbf16>, vector<128x128xbf16>, vector<2x128xf32> -> vector<2x128xf32>
    %29 = vector.broadcast %15 : vector<1x128xf32> to vector<2x128xf32>
    %30 = arith.addf %29, %28 : vector<2x128xf32>
    %c0_25 = arith.constant 0 : index
    %c0_26 = arith.constant 0 : index
    %31 = vector.load %arg10[%c0_25, %c0_26] : memref<2x128xf32, #tpu.memory_space<vmem>>, vector<2x128xf32>
    tpu.vector_store %arg10[%c0_25, %c0_26], %30 {strides = array<i32>} : memref<2x128xf32, #tpu.memory_space<vmem>>, vector<2x128xf32>,
    return
  }
  func.func @transform_0(%arg0: i32) -> (i32, i32) {
    %c0_i32 = arith.constant 0 : i32
    %c0_i32_0 = arith.constant 0 : i32
    return %arg0, %c0_i32 : i32, i32
  }
  func.func @transform_1(%arg0: i32) -> (i32, i32) {
    %c0_i32 = arith.constant 0 : i32
    %c0_i32_0 = arith.constant 0 : i32
    return %arg0, %c0_i32 : i32, i32
  }
  func.func @transform_2(%arg0: i32) -> (i32, i32) {
    %c0_i32 = arith.constant 0 : i32
    %c0_i32_0 = arith.constant 0 : i32
    %c0_i32_1 = arith.constant 0 : i32
    return %c0_i32, %c0_i32_0 : i32, i32
  }
  func.func @transform_3(%arg0: i32) -> (i32, i32) {
    %c0_i32 = arith.constant 0 : i32
    %c0_i32_0 = arith.constant 0 : i32
    %c0_i32_1 = arith.constant 0 : i32
    return %c0_i32, %c0_i32_0 : i32, i32
  }
  func.func @transform_4(%arg0: i32) -> (i32, i32) {
    %c0_i32 = arith.constant 0 : i32
    %c0_i32_0 = arith.constant 0 : i32
    %c0_i32_1 = arith.constant 0 : i32
    return %c0_i32, %c0_i32_0 : i32, i32
  }
  func.func @transform_5(%arg0: i32) -> (i32, i32, i32) {
    %c0_i32 = arith.constant 0 : i32
    %c0_i32_0 = arith.constant 0 : i32
    %c0_i32_1 = arith.constant 0 : i32
    %c0_i32_2 = arith.constant 0 : i32
    return %c0_i32, %c0_i32_0, %c0_i32_1 : i32, i32, i32
  }
  func.func @transform_6(%arg0: i32) -> (i32, i32, i32) {
    %c0_i32 = arith.constant 0 : i32
    %c0_i32_0 = arith.constant 0 : i32
    %c0_i32_1 = arith.constant 0 : i32
    %c0_i32_2 = arith.constant 0 : i32
    return %c0_i32, %c0_i32_0, %c0_i32_1 : i32, i32, i32
  }
  func.func @transform_7(%arg0: i32) -> (i32, i32, i32) {
    %c0_i32 = arith.constant 0 : i32
    %c0_i32_0 = arith.constant 0 : i32
    %c0_i32_1 = arith.constant 0 : i32
    %c0_i32_2 = arith.constant 0 : i32
    return %c0_i32, %c0_i32_0, %c0_i32_1 : i32, i32, i32
  }
  func.func @transform_8(%arg0: i32) -> (i32, i32) {
    %c0_i32 = arith.constant 0 : i32
    %c0_i32_0 = arith.constant 0 : i32
    %c0_i32_1 = arith.constant 0 : i32
    return %c0_i32, %c0_i32_0 : i32, i32
  }
  func.func @transform_9(%arg0: i32) -> (i32, i32) {
    %c0_i32 = arith.constant 0 : i32
    %c0_i32_0 = arith.constant 0 : i32
    return %arg0, %c0_i32 : i32, i32
  }
}

</mosaic_0001>

<bundles_post_ra>
// kernel: tpu_custom_call.1
= control target key start
LH: loop header
LB: loop body
LE: loop exit
PB: predicated region body
PF: predicated region fallthrough
CT: control target
= control target key end

     0   :  { %14 = vsyncpa [#allocation3], 0  ;;  %s689_s0 = inlined_call_operand.hbm [shape: f32[2,16], index: 0, kind: input, shape index: {}]   ;;  %s690_s1 = inlined_call_operand.hbm [shape: f32[2,4], index: 1, kind: input, shape index: {}]   ;;  %s691_s2 = inlined_call_operand.hbm [shape: bf16[16,128], index: 2, kind: input, shape index: {}]   ;;  %s692_s3 = inlined_call_operand.vmem [shape: bf16[4,128], index: 3, kind: input, shape index: {}]   ;;  %s693_s4 = inlined_call_operand.vmem [shape: f32[1,128], index: 4, kind: input, shape index: {}]   ;;  %s694_s5 = inlined_call_operand.hbm [shape: bf16[1,128,128], index: 5, kind: input, shape index: {}]   ;;  %s695_s6 = inlined_call_operand.vmem [shape: f32[1,1,128], index: 6, kind: input, shape index: {}]   ;;  %s696_s7 = inlined_call_operand.hbm [shape: bf16[1,128,128], index: 7, kind: input, shape index: {}]   ;;  %s697_s8 = inlined_call_operand.vmem [shape: f32[1,128], index: 8, kind: input, shape index: {}]   ;;  %s698_s9 = inlined_call_operand.hbm [shape: f32[2,128], index: 9, kind: output, shape index: {}]  }
   0x1   :  { %15 = vsyncpa [#allocation6], 0 }
   0x2   :  { %16 = vsyncpa [#allocation9], 0  ;;  %s34_s11 = sshll.u32 %s690_s1, 4  ;;  %s35_s11 = int_to_ptr.hbm [resolvable:$true] %s34_s11 }
   0x3   :  { %17 = vsyncpa [#allocation4], 0  ;;  %s601_s12 = smov [#allocation5]   ;;  %s61_s16 = sshll.u32 %s694_s5, 4  ;;  %s62_s16 = int_to_ptr.hbm [resolvable:$true] %s61_s16 }
   0x4   :  { %s36_s13 = sshll.u32 %s601_s12, 4  ;;  %s602_s17 = smov [#allocation8]   ;;  %s37_s13 = int_to_ptr.vmem [resolvable:$true] %s36_s13 }
   0x5   :  { %39 = dma.hbm_to_vmem [thread:$0]  %s35_s11, 32, %s37_s13, [#allocation6]  }
   0x6   :  { %s63_s18 = sshll.u32 %s602_s17, 4  ;;  %s23_s21 = sshll.u32 %s689_s0, 4  ;;  %s64_s18 = int_to_ptr.vmem [resolvable:$true] %s63_s18  ;;  %s24_s21 = int_to_ptr.hbm [resolvable:$true] %s23_s21 }
   0x7   :  { %s603_s1 = smov 64   ;;  %s604_s22 = smov 4  }
   0x8   :  { %69 = dma.hbm_to_vmem [thread:$0]  %s62_s16, 1024, %s64_s18, [#allocation9], %s603_s1, %s603_s1, %s604_s22  }
   0x9   :  { %s44_s25 = sshll.u32 %s691_s2, 4  ;;  %s605_s26 = smov [#allocation2]   ;;  %s45_s25 = int_to_ptr.hbm [resolvable:$true] %s44_s25 }
   0xa   :  { %s25_s27 = sshll.u32 %s605_s26, 4  ;;  %s606_s5 = smov [#allocation7]   ;;  %s26_s27 = int_to_ptr.vmem [resolvable:$true] %s25_s27 }
   0xb   :  { %28 = dma.hbm_to_vmem [thread:$0]  %s24_s21, 32, %s26_s27, [#allocation3]  }
   0xc   :  { %s46_s28 = sshll.u32 %s606_s5, 4  ;;  %s76_s0 = sshll.u32 %s696_s7, 4  ;;  %s47_s28 = int_to_ptr.vmem [resolvable:$true] %s46_s28  ;;  %s77_s0 = int_to_ptr.hbm [resolvable:$true] %s76_s0 }
   0xd   :  { %52 = dma.hbm_to_vmem [thread:$0]  %s45_s25, 128, %s47_s28, [#allocation6], %s603_s1, %s603_s1, %s604_s22  }
   0xe   :  { %s607_s10 = smov [#allocation10]  }
   0xf   :  { %s78_s11 = sshll.u32 %s607_s10, 4  ;;  %s79_s11 = int_to_ptr.vmem [resolvable:$true] %s78_s11 }
  0x10   :  { %84 = dma.hbm_to_vmem [thread:$0]  %s77_s0, 1024, %s79_s11, [#allocation9], %s603_s1, %s603_s1, %s604_s22  }
  0x11   :  { %593 = dma.done.wait [#allocation3], 32  }
  0x12   :  { %594 = vsyncadd [#allocation3], 4294967264 }
  0x13   :  { %595 = dma.done.wait [#allocation6], 160  }
  0x14   :  { %596 = vsyncadd [#allocation6], 4294967136 }
  0x15   :  { %597 = dma.done.wait [#allocation9], 2048  }
  0x16   :  { %598 = vsyncadd [#allocation9], 4294965248  ;;  %vm119_vm0 = vcmask 1041408   ;;  %v114_v0 = vld [vmem:[%s692_s3] sm:$0x3]  ;;  %v421_v1 = vld [vmem:[#allocation7] sm:$0xff] }
  0x17   :  { %v112_v2 = vld [vmem:[#allocation5] sm:$0x3]  ;;  %v121_v3 = vsel %vm119_vm0, %v114_v0, 0  ;;  %v108_v5 = vld [vmem:[#allocation2] sm:$0x3]  ;;  %v429_v6 = vld [vmem:[#allocation8 + $0x38] sm:$0xff]  ;;  %153 = vmatpush.bf16.msra.mxu1 %v421_v1 }
  0x18   :  { %v113_v4 = vpack.c.bf16 %v112_v2, %v112_v2  ;;  %130 = vmatpush.bf16.msra.mxu0 %v121_v3  ;;  %vm115_vm1 = vcmask 31744   ;;  %v109_v7 = vpack.c.bf16 %v108_v5, %v108_v5  ;;  %vm142_vm2 = vcmask 130048   ;;  %235 = vmatpush.bf16.msra.mxu2 %v429_v6  ;;  %v428_v8 = vld [vmem:[#allocation8 + $0x30] sm:$0xff]  ;;  %v427_v9 = vld [vmem:[#allocation8 + $0x28] sm:$0xff]  ;;  %v426_v10 = vld [vmem:[#allocation8 + $0x20] sm:$0xff]  ;;  %s608_s16 = smov [#allocation11]  }
  0x19   :  { %v425_v11 = vld [vmem:[#allocation8 + $0x18] sm:$0xff]  ;;  %v424_v12 = vld [vmem:[#allocation8 + $0x10] sm:$0xff]  ;;  %v423_v13 = vld [vmem:[#allocation8 + $0x8] sm:$0xff]  ;;  %s337_s17 = sshll.u32 %s608_s16, 4  ;;  %s339_s20 = sshll.u32 %s698_s9, 4  ;;  %s338_s17 = int_to_ptr.vmem [resolvable:$true] %s337_s17  ;;  %s340_s20 = int_to_ptr.hbm [resolvable:$true] %s339_s20 }
  0x1a   :  { %356 = vmatmul.msk.bf16.vlgmr.msra.gmra.mxu1 %vm142_vm2, %v109_v7  ;;  %v422_v14 = vld [vmem:[#allocation8] sm:$0xff]  ;;  %v437_v15 = vld [vmem:[#allocation10 + $0x38] sm:$0xff]  ;;  %v436_v16 = vld [vmem:[#allocation10 + $0x30] sm:$0xff] }
  0x1b   :  { %351 = vmatmul.msk.bf16.vlgmr.msra.gmra.mxu0 %vm115_vm1, %v113_v4  ;;  %314 = vmatpush.bf16.msra.mxu3 %v437_v15  ;;  %v435_v17 = vld [vmem:[#allocation10 + $0x28] sm:$0xff]  ;;  %v434_v18 = vld [vmem:[#allocation10 + $0x20] sm:$0xff]  ;;  %v433_v19 = vld [vmem:[#allocation10 + $0x18] sm:$0xff] }
  0x1c   :  { %236 = vmatpush.bf16.msra.mxu2 %v428_v8  ;;  %v432_v20 = vld [vmem:[#allocation10 + $0x10] sm:$0xff]  ;;  %v431_v30 = vld [vmem:[#allocation10 + $0x8] sm:$0xff]  ;;  %v430_v31 = vld [vmem:[#allocation10] sm:$0xff] }
  0x1d   :  { %v446_v21 = vld [vmem:[%s693_s4] ss:$0 sm:$0xff] }
  0x1e   :  { %v447_v32 = vld [vmem:[%s695_s6] ss:$0 sm:$0xff] }
  0x1f   :  { %315 = vmatpush.bf16.msra.mxu3 %v436_v16  ;;  %v448_v38 = vld [vmem:[%s697_s8] ss:$0 sm:$0xff] }
  0x20   :  { %237 = vmatpush.bf16.msra.mxu2 %v427_v9 }
  0x23   :  { %316 = vmatpush.bf16.msra.mxu3 %v435_v17 }
  0x24   :  { %238 = vmatpush.bf16.msra.mxu2 %v426_v10 }
  0x27   :  { %317 = vmatpush.bf16.msra.mxu3 %v434_v18 }
  0x28   :  { %239 = vmatpush.bf16.msra.mxu2 %v425_v11 }
  0x2b   :  { %318 = vmatpush.bf16.msra.mxu3 %v433_v19 }
  0x2c   :  { %240 = vmatpush.bf16.msra.mxu2 %v424_v12 }
  0x2f   :  { %319 = vmatpush.bf16.msra.mxu3 %v432_v20 }
  0x30   :  { %241 = vmatpush.bf16.msra.mxu2 %v423_v13 }
  0x33   :  { %320 = vmatpush.bf16.msra.mxu3 %v431_v30 }
  0x34   :  { %242 = vmatpush.bf16.msra.mxu2 %v422_v14 }
  0x37   :  { %321 = vmatpush.bf16.msra.mxu3 %v430_v31 }
  0x97   :  { %v155_v23 = vpop.f32.mrf.mxu1 }
  0x98   :  { %v132_v22 = vpop.f32.mrf.mxu0 }
  0x99   :  { %v156_v24 = vadd.f32 %v155_v23, %v132_v22 }
  0x9b   :  { %v163_v25 = vadd.f32 %v446_v21, %v156_v24 }
  0x9d   :  { %v164_v26 = vmax.f32 %v163_v25, 0.0 }
  0x9f   :  { %v165_v27 = vpack.c.bf16 %v164_v26, %v164_v26  ;;  %v157_v29 = vpop.f32.mrf.mxu1 }
  0xa0   :  { %v134_v28 = vpop.f32.mrf.mxu0 }
  0xa1   :  { %243 = vmatmul.bf16.vlgmr.msra.gmra.mxu2 %v165_v27 }
 0x124   :  { %v244_v33 = vpop.f32.mrf.mxu2 }
 0x125   :  { %v245_v34 = vadd.f32 %v447_v32, %v244_v33 }
 0x127   :  { %v248_v35 = vmax.f32 %v245_v34, 0.0 }
 0x129   :  { %v249_v36 = vpack.c.bf16 %v248_v35, %v248_v35 }
 0x12b   :  { %322 = vmatmul.bf16.vlgmr.msra.gmra.mxu3 %v249_v36 }
 0x12c   :  { %v246_v37 = vpop.f32.mrf.mxu2 }
 0x1ae   :  { %v323_v39 = vpop.f32.mrf.mxu3 }
 0x1af   :  { %v330_v40 = vadd.f32 %v448_v38, %v323_v39 }
 0x1b1   :  { %331 = vst [vmem:[#allocation11] sm:$0x3] %v330_v40 }
 0x1b2   :  { %342 = dma.vmem_to_hbm [thread:$0]  %s338_s17, 32, %s340_s20, [#allocation4]  }
 0x1b6   :  { %v325_v41 = vpop.f32.mrf.mxu3 }
 0x1b7   :  { %599 = dma.done.wait [#allocation4], 32  }
 0x1b8   :  { %600 = vsyncadd [#allocation4], 4294967264 }
 0x1b9   :  { %347 = vsyncpa [#allocation3], 1 }
 0x1ba   :  { %348 = vsyncpa [#allocation6], 1 }
 0x1bb   :  { %349 = vsyncpa [#allocation9], 1 }
 0x1bc   :  { %350 = vsyncpa [#allocation4], 1 }

</bundles_post_ra>
